<compile_context>
chip_gen: v6e
topology: v6e:2x2x1
jax: 0.10.0
libtpu: 0.0.40
codegen_flags: <defaults>
</compile_context>

<pallas_src>
import jax
import jax.numpy as jnp
from jax.experimental import pallas as pl
from jax.experimental.pallas import tpu as pltpu

LANES = 128                    # vreg lane width
SUBLANES = 8                   # f32 sublane count
MAX_BLOCK_ROWS = 8192          # 8192 x 128 x f32 = 4 MiB per buffer
SMALL_B_THRESHOLD = 1 << 16    # below this, plain XLA elementwise wins outright


def _linear_kernel(w_ref, b_ref, x_ref, o_ref):
    # w_ref / b_ref: (1,) f32 scalars in SMEM; x_ref / o_ref: (block_rows, 128) f32 in VMEM.
    o_ref[...] = x_ref[...] * w_ref[0] + b_ref[0]   # VPU broadcast mul-add, no MXU


def _pallas_linear_2d(x2, w, b, max_block_rows):
    """x2: (R, 128) f32 lane-dense slab -> x2 * w + b, same shape."""
    R = x2.shape[0]
    if R > 2 * SUBLANES:
        # >= 2 grid steps (lets the "parallel" axis shard across both v7x TCs),
        # block rows a multiple of 8, capped at max_block_rows.
        half = pl.cdiv(pl.cdiv(R, 2), SUBLANES) * SUBLANES
        block_rows = min(max_block_rows, half)
    else:
        block_rows = R  # single block equal to the full dim (always legal)
    num_blocks = pl.cdiv(R, block_rows)  # Pallas masks the ragged final block

    return pl.pallas_call(
        _linear_kernel,
        out_shape=jax.ShapeDtypeStruct((R, LANES), jnp.float32),
        grid=(num_blocks,),
        in_specs=[
            pl.BlockSpec(memory_space=pltpu.MemorySpace.SMEM),    # weight scalar
            pl.BlockSpec(memory_space=pltpu.MemorySpace.SMEM),    # bias scalar
            pl.BlockSpec((block_rows, LANES), lambda i: (i, 0)),  # x tile
        ],
        out_specs=pl.BlockSpec((block_rows, LANES), lambda i: (i, 0)),
        compiler_params=pltpu.CompilerParams(
            dimension_semantics=("parallel",),
            vmem_limit_bytes=48 * 1024 * 1024,   # 8192-row tiles exceed v5e's 16 MiB default
        ),
    )(w, b, x2)


def lr_forward(x, weight, bias, *, max_block_rows=MAX_BLOCK_ROWS,
               small_b_threshold=SMALL_B_THRESHOLD):
    """nn.Linear(1, 1): y = x @ weight.T + bias.  x: (B, 1) f32 -> (B, 1) f32."""
    B = x.shape[0]
    w = weight.reshape(1).astype(jnp.float32)
    b = bias.reshape(1).astype(jnp.float32)

    # Small-B fast path: launch + layout overhead dominates; fused XLA op wins.
    if B < small_b_threshold:
        return (x.astype(jnp.float32) * w[0] + b[0]).reshape(B, 1)

    xf = x.astype(jnp.float32).reshape(-1)          # (B,1)->(B,) is free (metadata)

    if B % LANES == 0:
        # Zero-copy path: contiguous reshape onto a lane-dense (R, 128) slab.
        # No pad, no slice -> no extra HBM passes; pure streaming at the roofline.
        R = B // LANES
        y2 = _pallas_linear_2d(xf.reshape(R, LANES), w, b, max_block_rows)
        return y2.reshape(B, 1)

    # Rare fallback: large B not a multiple of 128 -> pad to a full lane slab,
    # slice the padded tail off afterwards (costs one extra pass, correctness safe).
    R = pl.cdiv(B, LANES)
    xp = jnp.pad(xf, (0, R * LANES - B))
    y2 = _pallas_linear_2d(xp.reshape(R, LANES), w, b, max_block_rows)
    return y2.reshape(-1)[:B].reshape(B, 1)


if __name__ == "__main__":
    key = jax.random.PRNGKey(0)
    k_x, k_w, k_b = jax.random.split(key, 3)

    IN, OUT = 1, 1
    # Deterministic param init mimicking nn.Linear's U(-1/sqrt(fan_in), 1/sqrt(fan_in))
    bound = 1.0 / jnp.sqrt(jnp.float32(IN))
    weight = jax.random.uniform(k_w, (OUT, IN), jnp.float32, -bound, bound)
    bias = jax.random.uniform(k_b, (OUT,), jnp.float32, -bound, bound)

    def check(B, *, force_pallas):
        xb = jax.random.normal(jax.random.fold_in(k_x, B), (B, IN), dtype=jnp.float32)
        thr = 0 if force_pallas else SMALL_B_THRESHOLD
        y = lr_forward(xb, weight, bias, small_b_threshold=thr)
        jax.block_until_ready(y)
        y_ref = xb @ weight.T + bias                 # nn.Linear(1, 1) reference
        assert y.shape == (B, OUT)
        assert jnp.allclose(y, y_ref, atol=1e-5, rtol=1e-5), f"mismatch at B={B}"

    check(8, force_pallas=False)      # small batch -> XLA fast path (module-scale demo)
    check(8192, force_pallas=True)    # Pallas zero-copy path, 2 grid steps
    check(2560, force_pallas=True)    # Pallas zero-copy path, ragged final row-block
    check(1000, force_pallas=True)    # non-128-multiple B -> pad fallback path

    print("KERNEL_OK")
</pallas_src>

<mosaic_0001>
module attributes {stable_mosaic.version = 11 : i64} {
  func.func @_linear_kernel(%arg0: i32, %arg1: memref<1xf32, #tpu.memory_space<smem>>, %arg2: memref<1xf32, #tpu.memory_space<smem>>, %arg3: memref<32x128xf32, #tpu.memory_space<vmem>>, %arg4: memref<32x128xf32, #tpu.memory_space<vmem>>) attributes {dimension_semantics = [#tpu.dimension_semantics<parallel>], iteration_bounds = array<i64: 2>, scalar_prefetch = 0 : i64, scratch_operands = 0 : i64, tpu.core_type = #tpu.core_type<tc>, window_params = [{transform_indices = @transform_0, window_bounds = array<i64: 1>}, {transform_indices = @transform_1, window_bounds = array<i64: 1>}, {transform_indices = @transform_2, window_bounds = array<i64: 32, 128>}, {transform_indices = @transform_3, window_bounds = array<i64: 32, 128>}]} {
    %c0 = arith.constant 0 : index
    %c0_0 = arith.constant 0 : index
    %0 = vector.load %arg3[%c0, %c0_0] : memref<32x128xf32, #tpu.memory_space<vmem>>, vector<32x128xf32>
    %c0_1 = arith.constant 0 : index
    %1 = memref.load %arg1[%c0_1] : memref<1xf32, #tpu.memory_space<smem>>
    %2 = vector.broadcast %1 : f32 to vector<32x128xf32>
    %3 = arith.mulf %0, %2 : vector<32x128xf32>
    %c0_2 = arith.constant 0 : index
    %4 = memref.load %arg2[%c0_2] : memref<1xf32, #tpu.memory_space<smem>>
    %5 = vector.broadcast %4 : f32 to vector<32x128xf32>
    %6 = arith.addf %3, %5 : vector<32x128xf32>
    %c0_3 = arith.constant 0 : index
    %c0_4 = arith.constant 0 : index
    %7 = vector.load %arg4[%c0_3, %c0_4] : memref<32x128xf32, #tpu.memory_space<vmem>>, vector<32x128xf32>
    tpu.vector_store %arg4[%c0_3, %c0_4], %6 {strides = array<i32>} : memref<32x128xf32, #tpu.memory_space<vmem>>, vector<32x128xf32>,
    return
  }
  func.func @transform_0(%arg0: i32) -> i32 {
    %c0_i32 = arith.constant 0 : i32
    %c0_i32_0 = arith.constant 0 : i32
    return %c0_i32 : i32
  }
  func.func @transform_1(%arg0: i32) -> i32 {
    %c0_i32 = arith.constant 0 : i32
    %c0_i32_0 = arith.constant 0 : i32
    return %c0_i32 : i32
  }
  func.func @transform_2(%arg0: i32) -> (i32, i32) {
    %c0_i32 = arith.constant 0 : i32
    %c0_i32_0 = arith.constant 0 : i32
    return %arg0, %c0_i32 : i32, i32
  }
  func.func @transform_3(%arg0: i32) -> (i32, i32) {
    %c0_i32 = arith.constant 0 : i32
    %c0_i32_0 = arith.constant 0 : i32
    return %arg0, %c0_i32 : i32, i32
  }
}

</mosaic_0001>

<bundles_post_ra>
// kernel: tpu_custom_call.1
= control target key start
LH: loop header
LB: loop body
LE: loop exit
PB: predicated region body
PF: predicated region fallthrough
CT: control target
= control target key end

     0   :  { %s646_s0 = inlined_call_operand.<no memory space> [shape: f32[1], index: 0, kind: input, shape index: {}]   ;;  %s647_s1 = inlined_call_operand.<no memory space> [shape: f32[1], index: 1, kind: input, shape index: {}]   ;;  %s648_s2 = inlined_call_operand.hbm [shape: f32[64,128], index: 2, kind: input, shape index: {}]   ;;  %s649_s3 = inlined_call_operand.hbm [shape: f32[64,128], index: 3, kind: output, shape index: {}]  }
   0x1   :  { %8 = sst [smem:[#allocation2]] %s646_s0 }
   0x2   :  { %9 = sst [smem:[#allocation3]] %s647_s1 }
   0x3   :  { %10 = vsyncpa [#allocation5], 0 }
   0x4   :  { %12 = vsyncpa [#allocation5 + $0x1], 0 }
   0x5   :  { %13 = vsyncpa [#allocation6], 0 }
   0x6   :  { %15 = vsyncpa [#allocation6 + $0x1], 0  ;;  %s492_s16 = smov 0   ;;  %s494_s17 = smov 0  }
   0x7   :  { %s496_s18 = smov 0   ;;  %s498_s19 = smov 0  }
   0x8 LB: > { %s513_s0 = sadd.s32 4294967295, %s458_s19   ;;  %s300_s1 = sadd.s32 4294967294, %s458_s19   ;;  %s458_s19 = sphi %s498_s19, %s664_s19   ;;  %s454_s18 = sphi %s496_s18, %s663_s18   ;;  %s450_s17 = sphi %s494_s17, %s662_s17   ;;  %s446_s16 = sphi %s492_s16, %s661_s16  }
   0x9   : > { %s517_s20 = sadd.s32 1, %s458_s19   ;;  %s70_s21 = sadd.s32 1, %s454_s18 }
   0xa   : > { %s67_s22 = ssub.s32 %s458_s19, %s517_s20  ;;  %p77_p0 = scmp.ne.s32.totalorder %s454_s18, %s450_s17 }
   0xb   : > { %p68_p1 = scmp.eq.s32.totalorder %s67_s22, 0  ;;  %p78_p2 = scmp.eq.s32.totalorder %s458_s19, 0 }
   0xc   : > { %p83_p3 = scmp.ne.s32.totalorder %s450_s17, %s446_s16  ;;  %p84_p4 = scmp.eq.s32.totalorder %s513_s0, 0 }
   0xd   : > { %s529_s23 = scalar_select %p68_p1, %s454_s18, %s70_s21  }
   0xe   : > { %p531_p5 = por %p78_p2, %p77_p0  ;;  %p535_p6 = por %p84_p4, %p83_p3 }
   0xf   : > { %p107_p7 = scmp.eq.s32.totalorder %s513_s0, 1  ;;  %p113_p8 = scmp.eq.s32.totalorder %s300_s1, 1 }
  0x10   : > { %s653_s25 = scalar_select %p535_p6, 1, 0 }
  0x11   : > { %p328_p10 = scmp.lt.s32.totalorder %s458_s19, 2  ;;  %p542_p11 = por %p107_p7, %p77_p0 }
  0x12   : > { %p546_p12 = por %p113_p8, %p83_p3  ;;  %s139_s28 = sand.u32 1, %s454_s18  }
  0x13   : > { %s654_s26 = scalar_select %p542_p11, 1, 0 }
  0x14   : > { %s655_s27 = scalar_select %p546_p12, 1, 0 }
  0x15   : > { %s314_s29 = sshll.u32 %s458_s19, 9  ;;  %s303_s30 = sshll.u32 %s139_s28, 5 }
  0x16   : > { %s555_s6 = scalar_lea.hbm %s648_s2, %s314_s29  ;;  %s143_s7 = scalar_lea.vmem [#allocation4], %s303_s30 }
  0x17   : > { %s150_s8 = sshll.u32 %s143_s7, 4  ;;  %p559_p13 = pnand %p328_p10, %p531_p5  ;;  %s563_s8 = int_to_ptr.vmem [resolvable:$true] %s150_s8 }
  0x18   : > { %s565_s10 = scalar_lea.sflag [#allocation5], %s139_s28  ;;  %s366_s11 = scalar_lea.hbm %s555_s6, 512 }
  0x19   : > { %p367_p0 = scmp.ne.s32.totalorder %s555_s6, %s366_s11  ;;  %p368_p1 = pneg %p559_p13 }
  0x1a   : > { %s371_s14 = scalar_lea.hbm %s648_s2, 1024  ;;  %p372_p4 = scmp.lt.s32.totalorder %s555_s6, %s648_s2 }
  0x1b   : > { %p369_p2 = pnand %p368_p1, %p367_p0  ;;  %p373_p5 = scmp.lt.s32.totalorder %s371_s14, %s366_s11 }
  0x1d   : > { %p370_p3 = pneg %p369_p2  ;;  %p374_p7 = por %p373_p5, %p372_p4 }
  0x1f   : > { %p375_p8 = pnand %p374_p7, %p370_p3 }
  0x21   : > { %378 = shalt.err (!%p375_p8)
}
  0x22   : > { %s379_s21 = scalar_lea.vmem %s563_s8, 512  ;;  %s460_s22 = smov [#allocation4]  }
  0x23   : > { %p380_p10 = scmp.ne.s32.totalorder %s563_s8, %s379_s21  ;;  %s384_s24 = sshll.u32 %s460_s22, 4  ;;  %s385_s24 = int_to_ptr.vmem [resolvable:$false] %s384_s24 }
  0x24   : > { %s386_s28 = scalar_lea.vmem %s385_s24, 1024  ;;  %p387_p2 = scmp.lt.s32.totalorder %s563_s8, %s385_s24 }
  0x25   : > { %p382_p9 = pnand %p380_p10, %p368_p1  ;;  %p388_p12 = scmp.lt.s32.totalorder %s386_s28, %s379_s21 }
  0x27   : > { %p383_p0 = pneg %p382_p9  ;;  %p389_p11 = por %p388_p12, %p387_p2 }
  0x29   : > { %p390_p6 = pnand %p389_p11, %p383_p0 }
  0x2b   : > { %393 = shalt.err (!%p390_p6)
}
  0x2c   : > { %s461_s29 = smov 128   ;;  %s462_s30 = smov 8  }
  0x2d   : > { %323 = dma.hbm_to_vmem [thread:$0]  (!%p559_p13), %s555_s6, 512, %s563_s8, %s565_s10, %s461_s29, %s461_s29, %s462_s30  }
  0x2e   : > { %p306_p9 = scmp.ge.s32.totalorder %s458_s19, 1  ;;  %p158_p1 = scmp.lt.s32.totalorder %s458_s19, 3 }
  0x30   : > { %p159_p3 = pnand %p306_p9, %p158_p1 }
  0x31   : > { %s589_s4 = sand.u32 (!%p159_p3), 1, %s450_s17   ;;  %p657_p6 = scmp.ne.s32.totalorder (!%p159_p3), %s653_s25, 0 }
  0x32   : > { %162 = sbr.rel (%p159_p3) target bundleno = 83 (0x53), region = 32  ;;  %s307_s5 = sshll.u32 (!%p159_p3), %s589_s4, 5 }
  0x33   : > { %s165_s7 = scalar_lea.sflag (!%p159_p3), [#allocation5], %s589_s4  ;;  %s168_s11 = scalar_lea.vmem (!%p159_p3), [#allocation4], %s307_s5 }
  0x37   : > { %437 = dma.done.wait (%p657_p6), %s165_s7, 512  }
  0x38   : > { %439 = vsyncadd (%p657_p6), %s165_s7, 4294966784  ;;  %s197_s6 = sld [smem:[#allocation2]]  ;;  %v193_v0 = vld [vmem:[%s168_s11] sm:$0xff]  ;;  %s190_s9 = scalar_lea.vmem [#allocation7], %s307_s5  ;;  %v194_v2 = vld [vmem:[%s168_s11 + $0x8] sm:$0xff] }
  0x39   : > { %s203_s8 = sld [smem:[#allocation3]]  ;;  %s227_s10 = sshll.u32 %s190_s9, 4  ;;  %v195_v3 = vld [vmem:[%s168_s11 + $0x10] sm:$0xff]  ;;  %v196_v8 = vld [vmem:[%s168_s11 + $0x18] sm:$0xff]  ;;  %s598_s10 = int_to_ptr.vmem [resolvable:$true] %s227_s10 }
  0x3a   : > { %s315_s12 = sshll.u32 %s513_s0, 9  ;;  %s214_s0 = scalar_lea.sflag [#allocation6], %s589_s4 }
  0x3b   : > { %s603_s14 = scalar_lea.hbm %s649_s3, %s315_s12  ;;  %s394_s15 = scalar_lea.vmem %s598_s10, 512 }
  0x3c   : > { %p395_p11 = scmp.ne.s32.totalorder %s598_s10, %s394_s15  ;;  %p658_p12 = scmp.ne.s32.totalorder %s654_s26, 0 }
  0x3d   : > { %s463_s1 = smov [#allocation7]  }
  0x3e   : > { %v198_v1 = vstv %s197_s6  ;;  %p396_p13 = pnand %p395_p11, %p658_p12  ;;  %s398_s21 = sshll.u32 %s463_s1, 4  ;;  %s399_s21 = int_to_ptr.vmem [resolvable:$false] %s398_s21 }
  0x3f   : > { %v199_v4 = vmul.f32 %v198_v1, %v193_v0  ;;  %v204_v5 = vstv %s203_s8  ;;  %v200_v6 = vmul.f32 %v198_v1, %v194_v2  ;;  %v201_v7 = vmul.f32 %v198_v1, %v195_v3  ;;  %s400_s22 = scalar_lea.vmem %s399_s21, 1024  ;;  %p401_p5 = scmp.lt.s32.totalorder %s598_s10, %s399_s21 }
  0x40   : > { %v202_v9 = vmul.f32 %v198_v1, %v196_v8  ;;  %p397_p4 = pneg %p396_p13  ;;  %p402_p7 = scmp.lt.s32.totalorder %s400_s22, %s394_s15 }
  0x41   : > { %v205_v10 = vadd.f32 %v204_v5, %v199_v4  ;;  %v206_v11 = vadd.f32 %v204_v5, %v200_v6  ;;  %v207_v12 = vadd.f32 %v204_v5, %v201_v7 }
  0x42   : > { %v208_v13 = vadd.f32 %v204_v5, %v202_v9  ;;  %p403_p8 = por %p402_p7, %p401_p5 }
  0x43   : > { %209 = vst [vmem:[%s190_s9] sm:$0xff] %v205_v10  ;;  %210 = vst [vmem:[%s190_s9 + $0x8] sm:$0xff] %v206_v11 }
  0x44   : > { %211 = vst [vmem:[%s190_s9 + $0x10] sm:$0xff] %v207_v12  ;;  %212 = vst [vmem:[%s190_s9 + $0x18] sm:$0xff] %v208_v13  ;;  %p404_p10 = pnand %p403_p8, %p397_p4 }
  0x46   : > { %407 = shalt.err (!%p404_p10)
}
  0x47   : > { %s408_s24 = scalar_lea.hbm %s603_s14, 512  ;;  %s412_s30 = scalar_lea.hbm %s649_s3, 1024 }
  0x48   : > { %p409_p0 = scmp.ne.s32.totalorder %s603_s14, %s408_s24  ;;  %p413_p1 = scmp.lt.s32.totalorder %s603_s14, %s649_s3 }
  0x49   : > { %p414_p3 = scmp.lt.s32.totalorder %s412_s30, %s408_s24 }
  0x4a   : > { %p410_p2 = pnand %p409_p0, %p658_p12 }
  0x4b   : > { %p415_p6 = por %p414_p3, %p413_p1 }
  0x4c   : > { %p411_p9 = pneg %p410_p2 }
  0x4e   : > { %p416_p11 = pnand %p415_p6, %p411_p9 }
  0x50   : > { %419 = shalt.err (!%p416_p11)
}
  0x51   : > { %s464_s11 = smov 128   ;;  %s465_s6 = smov 8  }
  0x52   : > { %318 = dma.vmem_to_hbm [thread:$0]  (%p658_p12), %s598_s10, 512, %s603_s14, %s214_s0, %s464_s11, %s464_s11, %s465_s6  }
  0x53 PF: > { %s242_s8 = sand.u32 1, %s446_s16   ;;  %p659_p13 = scmp.ne.s32.totalorder %s655_s27, 0 }
  0x54   : > { %p660_p4 = scmp.ge.s32.totalorder %s458_s19, 2  ;;  %s243_s9 = scalar_lea.sflag [#allocation6], %s242_s8 }
  0x56   : > { %p325_p5 = pnand %p660_p4, %p659_p13 }
  0x58   : > { %p326_p7 = pneg %p325_p5 }
  0x5a   : > { %441 = dma.done.wait (%p326_p7), %s243_s9, 512  }
  0x5b   : > { %443 = vsyncadd (%p326_p7), %s243_s9, 4294966784  ;;  %p18_p8 = scmp.ge.s32.totalorder %s517_s20, 4   ;;  %s661_s16 = smov %s450_s17 }
  0x5c   : > { %s662_s17 = smov %s454_s18  ;;  %s663_s18 = smov %s529_s23 }
  0x5d   : > { %s664_s19 = smov %s517_s20  ;;  %20 = sbr.rel (!%p18_p8) target bundleno = 8 (0x8), region = 77 }
  0x62   :  { %248 = vsyncpa [#allocation5], 1 }
  0x63   :  { %250 = vsyncpa [#allocation5 + $0x1], 1 }
  0x64   :  { %251 = vsyncpa [#allocation6], 1 }
  0x65   :  { %253 = vsyncpa [#allocation6 + $0x1], 1 }

</bundles_post_ra>
